<compile_context>
chip_gen: v5e
topology: v5e:2x2
jax: 0.10.0
libtpu: 0.0.40
codegen_flags: <defaults>
</compile_context>

<pallas_src>
import functools
import math

import jax
import jax.numpy as jnp
from jax import lax
from jax.experimental import pallas as pl
from jax.experimental.pallas import tpu as pltpu


_CAT_WIDTHS = {1: (11, 2, 7, 2, 2), 2: (10, 3, 3, 2, 5)}
_N_CONT = 5


def _make_mlp_kernel(widths):
    """Build the fused 4-layer MLP kernel for a given categorical-width tuple."""
    offs = tuple(int(sum(widths[:i])) for i in range(len(widths)))
    n_cat = int(sum(widths))

    def kernel(xc_ref, z_ref, w1c_ref, w1k_ref, b1_ref, w2_ref, b2_ref,
               w3_ref, b3_ref, w4_ref, b4_ref, o_ref):
        # xc_ref: (TB, 5) f32 continuous cols      z_ref: (TB, 5) int32 codes-1
        # w1c: (5, H1) bf16   w1k: (n_cat, H1) bf16   w2/w3/w4: (K, N) bf16
        # bN : (1, N) f32                            o_ref: (TB, H4) f32
        tb = xc_ref.shape[0]

        # ---- one-hot expansion in-kernel (pure VPU work) -------------------
        z = z_ref[...]                                           # (TB, 5)
        col = lax.broadcasted_iota(jnp.int32, (tb, n_cat), 1)
        hit = None
        for i, (w, off) in enumerate(zip(widths, offs)):
            zi = z[:, i:i + 1]                                   # (TB, 1)
            # Range mask matches one_hot semantics (all-zero row if invalid).
            hi = (col == zi + off) & (zi >= 0) & (zi < w)
            hit = hi if hit is None else (hit | hi)
        onehot = jnp.where(hit, 1.0, 0.0).astype(jnp.bfloat16)   # (TB, n_cat)

        xc = xc_ref[...].astype(jnp.bfloat16)                    # (TB, 5)

        # ---- layer 1: continuous rows + one-hot rows of W1 (bf16 MXU, f32 acc)
        h = jnp.dot(xc, w1c_ref[...], preferred_element_type=jnp.float32)
        h = h + jnp.dot(onehot, w1k_ref[...],
                        preferred_element_type=jnp.float32)
        h = jnp.tanh(h + b1_ref[...])                            # f32
        # ---- layer 2 --------------------------------------------------------
        h = jnp.dot(h.astype(jnp.bfloat16), w2_ref[...],
                    preferred_element_type=jnp.float32)
        h = jnp.tanh(h + b2_ref[...])
        # ---- layer 3 --------------------------------------------------------
        h = jnp.dot(h.astype(jnp.bfloat16), w3_ref[...],
                    preferred_element_type=jnp.float32)
        h = jnp.tanh(h + b3_ref[...])
        # ---- layer 4 (no activation) ----------------------------------------
        h = jnp.dot(h.astype(jnp.bfloat16), w4_ref[...],
                    preferred_element_type=jnp.float32)
        o_ref[...] = (h + b4_ref[...]).astype(o_ref.dtype)

    return kernel


def prepare_params(params):
    """One-time parameter prep (outside the hot path):
       - transpose PyTorch (out, in) weights to (in, out)  -> clean (M,K)x(K,N)
         MXU matmuls, no in-kernel relayout,
       - cast matmul operands to bf16 (MXU-native), biases stay f32,
       - split W1 into continuous / categorical row blocks so the one-hot
         expansion can be done inside the kernel."""
    w1t = jnp.asarray(params["w1"], jnp.float32).T               # (D_in, H1)
    tw = lambda w: jnp.asarray(w, jnp.float32).T.astype(jnp.bfloat16)
    tb = lambda v: jnp.asarray(v, jnp.float32).reshape(1, -1)
    return {
        "w1c": w1t[:_N_CONT].astype(jnp.bfloat16),               # (5, H1)
        "w1k": w1t[_N_CONT:].astype(jnp.bfloat16),               # (n_cat, H1)
        "b1": tb(params["b1"]),
        "w2": tw(params["w2"]), "b2": tb(params["b2"]),
        "w3": tw(params["w3"]), "b3": tb(params["b3"]),
        "w4": tw(params["w4"]), "b4": tb(params["b4"]),
    }


@functools.partial(jax.jit, static_argnames=("client", "batch_tile"))
def client_leakyrelu_net_4_bm(x, prep, client=1, batch_tile=1024):
    """Forward pass of Client_LeakyreluNet_4_bm.

    x    : (B, 10) f32 -- 5 continuous cols + 5 categorical codes (1-based)
    prep : output of prepare_params(params)
    returns (B, n_hidden_4) f32
    """
    # TODO(synk): the original forward raises ValueError on a host-side
    # np.isnan(x) check; a host assertion has no in-kernel equivalent and is
    # intentionally omitted.
    widths = _CAT_WIDTHS[client]
    B = x.shape[0]
    x = x.astype(jnp.float32)
    x_cont = x[:, :_N_CONT]                                      # (B, 5) f32
    z = (x[:, _N_CONT:2 * _N_CONT] - 1.0).astype(jnp.int32)      # .long() trunc

    out_dim = prep["w4"].shape[1]
    kernel = _make_mlp_kernel(widths)
    weight_ops = (prep["w1c"], prep["w1k"], prep["b1"], prep["w2"], prep["b2"],
                  prep["w3"], prep["b3"], prep["w4"], prep["b4"])

    n_tiles = pl.cdiv(B, batch_tile)

    if n_tiles <= 1:
        # Single-tile path: everything (incl. the (B, 1024) layer-1
        # intermediate) fits trivially in VMEM -> gridless fused call, no
        # pipeline machinery.
        vmem = pl.BlockSpec(memory_space=pltpu.MemorySpace.VMEM)
        return pl.pallas_call(
            kernel,
            out_shape=jax.ShapeDtypeStruct((B, out_dim), jnp.float32),
            in_specs=[vmem] * (2 + len(weight_ops)),
            out_specs=vmem,
        )(x_cont, z, *weight_ops)

    # Streaming path: pad the batch to a tile multiple (cdiv grid), stream
    # x/out tiles over a "parallel" axis (megacore-shardable), keep the small
    # bf16 weights VMEM-resident (constant index_map => no re-DMA per step).
    b_pad = n_tiles * batch_tile
    if b_pad != B:
        pad = b_pad - B
        x_cont = jnp.pad(x_cont, ((0, pad), (0, 0)))
        z = jnp.pad(z, ((0, pad), (0, 0)))

    const = lambda a: pl.BlockSpec(a.shape, lambda i: (0, 0))
    in_specs = [
        pl.BlockSpec((batch_tile, _N_CONT), lambda i: (i, 0)),   # x_cont tile
        pl.BlockSpec((batch_tile, _N_CONT), lambda i: (i, 0)),   # z tile
    ] + [const(a) for a in weight_ops]
    # NOTE: out_dim=64 (< 128 lanes) means masked stores; padding the last
    # layer to 128 outputs was reviewed as a modest win here and is skipped.
    # pl.Buffered(1) on the constant weight specs would save ~0.4 MiB VMEM;
    # skipped as we are far from the scoped limit at this tile size.
    out_specs = pl.BlockSpec((batch_tile, out_dim), lambda i: (i, 0))

    out = pl.pallas_call(
        kernel,
        out_shape=jax.ShapeDtypeStruct((b_pad, out_dim), jnp.float32),
        grid=(n_tiles,),
        in_specs=in_specs,
        out_specs=out_specs,
        compiler_params=pltpu.CompilerParams(
            dimension_semantics=("parallel",),
            vmem_limit_bytes=32 * 1024 * 1024),
    )(x_cont, z, *weight_ops)
    return out[:B] if b_pad != B else out


# ----------------------------- references -----------------------------------
def _reference_f32(x, params, client):
    """Exact f32 module semantics (PyTorch forward re-expressed in JAX)."""
    widths = _CAT_WIDTHS[client]
    x = x.astype(jnp.float32)
    z = (x[:, _N_CONT:2 * _N_CONT] - 1.0).astype(jnp.int32)
    parts = [x[:, :_N_CONT]] + [jax.nn.one_hot(z[:, i], w, dtype=jnp.float32)
                                for i, w in enumerate(widths)]
    xe = jnp.concatenate(parts, axis=1)
    h = jnp.tanh(xe @ params["w1"].T + params["b1"])
    h = jnp.tanh(h @ params["w2"].T + params["b2"])
    h = jnp.tanh(h @ params["w3"].T + params["b3"])
    return h @ params["w4"].T + params["b4"]


def _reference_bf16(x, prep, client):
    """Reference with the same bf16-operand / f32-accumulate recipe as the kernel."""
    widths = _CAT_WIDTHS[client]
    x = x.astype(jnp.float32)
    xc = x[:, :_N_CONT].astype(jnp.bfloat16)
    z = (x[:, _N_CONT:2 * _N_CONT] - 1.0).astype(jnp.int32)
    oh = jnp.concatenate([jax.nn.one_hot(z[:, i], w, dtype=jnp.bfloat16)
                          for i, w in enumerate(widths)], axis=1)
    h = (jnp.dot(xc, prep["w1c"], preferred_element_type=jnp.float32)
         + jnp.dot(oh, prep["w1k"], preferred_element_type=jnp.float32))
    h = jnp.tanh(h + prep["b1"])
    h = jnp.dot(h.astype(jnp.bfloat16), prep["w2"],
                preferred_element_type=jnp.float32)
    h = jnp.tanh(h + prep["b2"])
    h = jnp.dot(h.astype(jnp.bfloat16), prep["w3"],
                preferred_element_type=jnp.float32)
    h = jnp.tanh(h + prep["b3"])
    h = jnp.dot(h.astype(jnp.bfloat16), prep["w4"],
                preferred_element_type=jnp.float32)
    return h + prep["b4"]


def _init_linear(key, fan_in, fan_out):
    kw, kb = jax.random.split(key)
    bound = 1.0 / math.sqrt(fan_in)
    w = jax.random.uniform(kw, (fan_out, fan_in), jnp.float32, -bound, bound)
    b = jax.random.uniform(kb, (fan_out,), jnp.float32, -bound, bound)
    return w, b


if __name__ == "__main__":
    client = 1
    n_h1, n_h2, n_h3, n_h4 = 1024, 64, 64, 64
    d_in = _N_CONT + sum(_CAT_WIDTHS[client])        # 29

    key = jax.random.PRNGKey(0)
    k1, k2, k3, k4, kx1, kx2 = jax.random.split(key, 6)

    params = {}
    params["w1"], params["b1"] = _init_linear(k1, d_in, n_h1)
    params["w2"], params["b2"] = _init_linear(k2, n_h1, n_h2)
    params["w3"], params["b3"] = _init_linear(k3, n_h2, n_h3)
    params["w4"], params["b4"] = _init_linear(k4, n_h3, n_h4)
    prep = prepare_params(params)

    def make_input(k, batch):
        kc, kn = jax.random.split(k)
        cont = jax.random.normal(kn, (batch, _N_CONT), jnp.float32)
        cols = [jax.random.randint(jax.random.fold_in(kc, i), (batch, 1), 1, w + 1)
                for i, w in enumerate(_CAT_WIDTHS[client])]
        cats = jnp.concatenate(cols, axis=1).astype(jnp.float32)
        return jnp.concatenate([cont, cats], axis=1)             # (batch, 10)

    # --- small batch: single-tile gridless fused call -----------------------
    x_small = make_input(kx1, 8)
    out_small = jax.block_until_ready(
        client_leakyrelu_net_4_bm(x_small, prep, client=client))
    assert out_small.shape == (8, n_h4)
    ref_bf = _reference_bf16(x_small, prep, client)
    ref_f32 = _reference_f32(x_small, params, client)
    assert jnp.allclose(out_small, ref_bf, atol=5e-3, rtol=5e-3), \
        float(jnp.max(jnp.abs(out_small - ref_bf)))
    assert jnp.allclose(out_small, ref_f32, atol=2.5e-2, rtol=2.5e-2), \
        float(jnp.max(jnp.abs(out_small - ref_f32)))

    # --- non-tile-multiple batch: cdiv grid + padding (streaming path) ------
    x_big = make_input(kx2, 600)
    out_big = jax.block_until_ready(
        client_leakyrelu_net_4_bm(x_big, prep, client=client, batch_tile=256))
    assert out_big.shape == (600, n_h4)
    ref_bf_b = _reference_bf16(x_big, prep, client)
    ref_f32_b = _reference_f32(x_big, params, client)
    assert jnp.allclose(out_big, ref_bf_b, atol=5e-3, rtol=5e-3), \
        float(jnp.max(jnp.abs(out_big - ref_bf_b)))
    assert jnp.allclose(out_big, ref_f32_b, atol=2.5e-2, rtol=2.5e-2), \
        float(jnp.max(jnp.abs(out_big - ref_f32_b)))

    print("KERNEL_OK")
</pallas_src>

<mosaic_0001>
module attributes {stable_mosaic.version = 11 : i64} {
  func.func @kernel(%arg0: memref<8x5xf32, #tpu.memory_space<vmem>>, %arg1: memref<8x5xi32, #tpu.memory_space<vmem>>, %arg2: memref<5x1024xbf16, #tpu.memory_space<vmem>>, %arg3: memref<24x1024xbf16, #tpu.memory_space<vmem>>, %arg4: memref<1x1024xf32, #tpu.memory_space<vmem>>, %arg5: memref<1024x64xbf16, #tpu.memory_space<vmem>>, %arg6: memref<1x64xf32, #tpu.memory_space<vmem>>, %arg7: memref<64x64xbf16, #tpu.memory_space<vmem>>, %arg8: memref<1x64xf32, #tpu.memory_space<vmem>>, %arg9: memref<64x64xbf16, #tpu.memory_space<vmem>>, %arg10: memref<1x64xf32, #tpu.memory_space<vmem>>, %arg11: memref<8x64xf32, #tpu.memory_space<vmem>>) attributes {dimension_semantics = [], scalar_prefetch = 0 : i64, scratch_operands = 0 : i64, tpu.core_type = #tpu.core_type<tc>} {
    %c0 = arith.constant 0 : index
    %c0_0 = arith.constant 0 : index
    %0 = vector.load %arg1[%c0, %c0_0] : memref<8x5xi32, #tpu.memory_space<vmem>>, vector<8x5xi32>
    %1 = tpu.iota {dimensions = array<i32: 1>} : vector<8x24xi32>
    %2 = vector.extract_strided_slice %0 {offsets = [0, 0], sizes = [8, 1], strides = [1, 1]} : vector<8x5xi32> to vector<8x1xi32>
    %c0_i32 = arith.constant 0 : i32
    %3 = vector.broadcast %c0_i32 : i32 to vector<8x1xi32>
    %4 = arith.addi %2, %3 : vector<8x1xi32>
    %5 = vector.broadcast %4 : vector<8x1xi32> to vector<8x24xi32>
    %6 = arith.cmpi eq, %1, %5 : vector<8x24xi32>
    %c0_i32_1 = arith.constant 0 : i32
    %7 = vector.broadcast %c0_i32_1 : i32 to vector<8x1xi32>
    %8 = arith.cmpi sge, %2, %7 : vector<8x1xi32>
    %9 = vector.broadcast %8 : vector<8x1xi1> to vector<8x24xi1>
    %10 = arith.andi %6, %9 : vector<8x24xi1>
    %c11_i32 = arith.constant 11 : i32
    %11 = vector.broadcast %c11_i32 : i32 to vector<8x1xi32>
    %12 = arith.cmpi slt, %2, %11 : vector<8x1xi32>
    %13 = vector.broadcast %12 : vector<8x1xi1> to vector<8x24xi1>
    %14 = arith.andi %10, %13 : vector<8x24xi1>
    %15 = vector.extract_strided_slice %0 {offsets = [0, 1], sizes = [8, 1], strides = [1, 1]} : vector<8x5xi32> to vector<8x1xi32>
    %c11_i32_2 = arith.constant 11 : i32
    %16 = vector.broadcast %c11_i32_2 : i32 to vector<8x1xi32>
    %17 = arith.addi %15, %16 : vector<8x1xi32>
    %18 = vector.broadcast %17 : vector<8x1xi32> to vector<8x24xi32>
    %19 = arith.cmpi eq, %1, %18 : vector<8x24xi32>
    %c0_i32_3 = arith.constant 0 : i32
    %20 = vector.broadcast %c0_i32_3 : i32 to vector<8x1xi32>
    %21 = arith.cmpi sge, %15, %20 : vector<8x1xi32>
    %22 = vector.broadcast %21 : vector<8x1xi1> to vector<8x24xi1>
    %23 = arith.andi %19, %22 : vector<8x24xi1>
    %c2_i32 = arith.constant 2 : i32
    %24 = vector.broadcast %c2_i32 : i32 to vector<8x1xi32>
    %25 = arith.cmpi slt, %15, %24 : vector<8x1xi32>
    %26 = vector.broadcast %25 : vector<8x1xi1> to vector<8x24xi1>
    %27 = arith.andi %23, %26 : vector<8x24xi1>
    %28 = arith.ori %14, %27 : vector<8x24xi1>
    %29 = vector.extract_strided_slice %0 {offsets = [0, 2], sizes = [8, 1], strides = [1, 1]} : vector<8x5xi32> to vector<8x1xi32>
    %c13_i32 = arith.constant 13 : i32
    %30 = vector.broadcast %c13_i32 : i32 to vector<8x1xi32>
    %31 = arith.addi %29, %30 : vector<8x1xi32>
    %32 = vector.broadcast %31 : vector<8x1xi32> to vector<8x24xi32>
    %33 = arith.cmpi eq, %1, %32 : vector<8x24xi32>
    %c0_i32_4 = arith.constant 0 : i32
    %34 = vector.broadcast %c0_i32_4 : i32 to vector<8x1xi32>
    %35 = arith.cmpi sge, %29, %34 : vector<8x1xi32>
    %36 = vector.broadcast %35 : vector<8x1xi1> to vector<8x24xi1>
    %37 = arith.andi %33, %36 : vector<8x24xi1>
    %c7_i32 = arith.constant 7 : i32
    %38 = vector.broadcast %c7_i32 : i32 to vector<8x1xi32>
    %39 = arith.cmpi slt, %29, %38 : vector<8x1xi32>
    %40 = vector.broadcast %39 : vector<8x1xi1> to vector<8x24xi1>
    %41 = arith.andi %37, %40 : vector<8x24xi1>
    %42 = arith.ori %28, %41 : vector<8x24xi1>
    %43 = vector.extract_strided_slice %0 {offsets = [0, 3], sizes = [8, 1], strides = [1, 1]} : vector<8x5xi32> to vector<8x1xi32>
    %c20_i32 = arith.constant 20 : i32
    %44 = vector.broadcast %c20_i32 : i32 to vector<8x1xi32>
    %45 = arith.addi %43, %44 : vector<8x1xi32>
    %46 = vector.broadcast %45 : vector<8x1xi32> to vector<8x24xi32>
    %47 = arith.cmpi eq, %1, %46 : vector<8x24xi32>
    %c0_i32_5 = arith.constant 0 : i32
    %48 = vector.broadcast %c0_i32_5 : i32 to vector<8x1xi32>
    %49 = arith.cmpi sge, %43, %48 : vector<8x1xi32>
    %50 = vector.broadcast %49 : vector<8x1xi1> to vector<8x24xi1>
    %51 = arith.andi %47, %50 : vector<8x24xi1>
    %c2_i32_6 = arith.constant 2 : i32
    %52 = vector.broadcast %c2_i32_6 : i32 to vector<8x1xi32>
    %53 = arith.cmpi slt, %43, %52 : vector<8x1xi32>
    %54 = vector.broadcast %53 : vector<8x1xi1> to vector<8x24xi1>
    %55 = arith.andi %51, %54 : vector<8x24xi1>
    %56 = arith.ori %42, %55 : vector<8x24xi1>
    %57 = vector.extract_strided_slice %0 {offsets = [0, 4], sizes = [8, 1], strides = [1, 1]} : vector<8x5xi32> to vector<8x1xi32>
    %c22_i32 = arith.constant 22 : i32
    %58 = vector.broadcast %c22_i32 : i32 to vector<8x1xi32>
    %59 = arith.addi %57, %58 : vector<8x1xi32>
    %60 = vector.broadcast %59 : vector<8x1xi32> to vector<8x24xi32>
    %61 = arith.cmpi eq, %1, %60 : vector<8x24xi32>
    %c0_i32_7 = arith.constant 0 : i32
    %62 = vector.broadcast %c0_i32_7 : i32 to vector<8x1xi32>
    %63 = arith.cmpi sge, %57, %62 : vector<8x1xi32>
    %64 = vector.broadcast %63 : vector<8x1xi1> to vector<8x24xi1>
    %65 = arith.andi %61, %64 : vector<8x24xi1>
    %c2_i32_8 = arith.constant 2 : i32
    %66 = vector.broadcast %c2_i32_8 : i32 to vector<8x1xi32>
    %67 = arith.cmpi slt, %57, %66 : vector<8x1xi32>
    %68 = vector.broadcast %67 : vector<8x1xi1> to vector<8x24xi1>
    %69 = arith.andi %65, %68 : vector<8x24xi1>
    %70 = arith.ori %56, %69 : vector<8x24xi1>
    %cst = arith.constant 1.000000e+00 : f32
    %cst_9 = arith.constant 0.000000e+00 : f32
    %71 = vector.broadcast %cst : f32 to vector<8x24xf32>
    %72 = vector.broadcast %cst_9 : f32 to vector<8x24xf32>
    %73 = arith.select %70, %71, %72 : vector<8x24xi1>, vector<8x24xf32>
    %74 = arith.truncf %73 : vector<8x24xf32> to vector<8x24xbf16>
    %c0_10 = arith.constant 0 : index
    %c0_11 = arith.constant 0 : index
    %75 = vector.load %arg0[%c0_10, %c0_11] : memref<8x5xf32, #tpu.memory_space<vmem>>, vector<8x5xf32>
    %76 = arith.truncf %75 : vector<8x5xf32> to vector<8x5xbf16>
    %c0_12 = arith.constant 0 : index
    %c0_13 = arith.constant 0 : index
    %77 = vector.load %arg2[%c0_12, %c0_13] : memref<5x1024xbf16, #tpu.memory_space<vmem>>, vector<5x1024xbf16>
    %cst_14 = arith.constant dense<0.000000e+00> : vector<8x1024xf32>
    %78 = tpu.matmul %76, %77, %cst_14 {dimension_numbers = #tpu.dot_dimension_numbers<[1], [0], [0], [1], [0, 0, 1, 1], [], []>} : vector<8x5xbf16>, vector<5x1024xbf16>, vector<8x1024xf32> -> vector<8x1024xf32>
    %c0_15 = arith.constant 0 : index
    %c0_16 = arith.constant 0 : index
    %79 = vector.load %arg3[%c0_15, %c0_16] : memref<24x1024xbf16, #tpu.memory_space<vmem>>, vector<24x1024xbf16>
    %cst_17 = arith.constant dense<0.000000e+00> : vector<8x1024xf32>
    %80 = tpu.matmul %74, %79, %cst_17 {dimension_numbers = #tpu.dot_dimension_numbers<[1], [0], [0], [1], [0, 0, 1, 1], [], []>} : vector<8x24xbf16>, vector<24x1024xbf16>, vector<8x1024xf32> -> vector<8x1024xf32>
    %81 = arith.addf %78, %80 : vector<8x1024xf32>
    %c0_18 = arith.constant 0 : index
    %c0_19 = arith.constant 0 : index
    %82 = vector.load %arg4[%c0_18, %c0_19] : memref<1x1024xf32, #tpu.memory_space<vmem>>, vector<1x1024xf32>
    %83 = vector.broadcast %82 : vector<1x1024xf32> to vector<8x1024xf32>
    %84 = arith.addf %81, %83 : vector<8x1024xf32>
    %85 = math.tanh %84 : vector<8x1024xf32>
    %86 = arith.truncf %85 : vector<8x1024xf32> to vector<8x1024xbf16>
    %c0_20 = arith.constant 0 : index
    %c0_21 = arith.constant 0 : index
    %87 = vector.load %arg5[%c0_20, %c0_21] : memref<1024x64xbf16, #tpu.memory_space<vmem>>, vector<1024x64xbf16>
    %cst_22 = arith.constant dense<0.000000e+00> : vector<8x64xf32>
    %88 = tpu.matmul %86, %87, %cst_22 {dimension_numbers = #tpu.dot_dimension_numbers<[1], [0], [0], [1], [0, 0, 1, 1], [], []>} : vector<8x1024xbf16>, vector<1024x64xbf16>, vector<8x64xf32> -> vector<8x64xf32>
    %c0_23 = arith.constant 0 : index
    %c0_24 = arith.constant 0 : index
    %89 = vector.load %arg6[%c0_23, %c0_24] : memref<1x64xf32, #tpu.memory_space<vmem>>, vector<1x64xf32>
    %90 = vector.broadcast %89 : vector<1x64xf32> to vector<8x64xf32>
    %91 = arith.addf %88, %90 : vector<8x64xf32>
    %92 = math.tanh %91 : vector<8x64xf32>
    %93 = arith.truncf %92 : vector<8x64xf32> to vector<8x64xbf16>
    %c0_25 = arith.constant 0 : index
    %c0_26 = arith.constant 0 : index
    %94 = vector.load %arg7[%c0_25, %c0_26] : memref<64x64xbf16, #tpu.memory_space<vmem>>, vector<64x64xbf16>
    %cst_27 = arith.constant dense<0.000000e+00> : vector<8x64xf32>
    %95 = tpu.matmul %93, %94, %cst_27 {dimension_numbers = #tpu.dot_dimension_numbers<[1], [0], [0], [1], [0, 0, 1, 1], [], []>} : vector<8x64xbf16>, vector<64x64xbf16>, vector<8x64xf32> -> vector<8x64xf32>
    %c0_28 = arith.constant 0 : index
    %c0_29 = arith.constant 0 : index
    %96 = vector.load %arg8[%c0_28, %c0_29] : memref<1x64xf32, #tpu.memory_space<vmem>>, vector<1x64xf32>
    %97 = vector.broadcast %96 : vector<1x64xf32> to vector<8x64xf32>
    %98 = arith.addf %95, %97 : vector<8x64xf32>
    %99 = math.tanh %98 : vector<8x64xf32>
    %100 = arith.truncf %99 : vector<8x64xf32> to vector<8x64xbf16>
    %c0_30 = arith.constant 0 : index
    %c0_31 = arith.constant 0 : index
    %101 = vector.load %arg9[%c0_30, %c0_31] : memref<64x64xbf16, #tpu.memory_space<vmem>>, vector<64x64xbf16>
    %cst_32 = arith.constant dense<0.000000e+00> : vector<8x64xf32>
    %102 = tpu.matmul %100, %101, %cst_32 {dimension_numbers = #tpu.dot_dimension_numbers<[1], [0], [0], [1], [0, 0, 1, 1], [], []>} : vector<8x64xbf16>, vector<64x64xbf16>, vector<8x64xf32> -> vector<8x64xf32>
    %c0_33 = arith.constant 0 : index
    %c0_34 = arith.constant 0 : index
    %103 = vector.load %arg10[%c0_33, %c0_34] : memref<1x64xf32, #tpu.memory_space<vmem>>, vector<1x64xf32>
    %104 = vector.broadcast %103 : vector<1x64xf32> to vector<8x64xf32>
    %105 = arith.addf %102, %104 : vector<8x64xf32>
    %c0_35 = arith.constant 0 : index
    %c0_36 = arith.constant 0 : index
    %106 = vector.load %arg11[%c0_35, %c0_36] : memref<8x64xf32, #tpu.memory_space<vmem>>, vector<8x64xf32>
    tpu.vector_store %arg11[%c0_35, %c0_36], %105 {strides = array<i32>} : memref<8x64xf32, #tpu.memory_space<vmem>>, vector<8x64xf32>,
    return
  }
}

</mosaic_0001>

<bundles_post_ra>
// kernel: client_leakyrelu_net_4_bm.1
= control target key start
LH: loop header
LB: loop body
LE: loop exit
PB: predicated region body
PF: predicated region fallthrough
CT: control target
= control target key end

     0   :  { %v1774_v1 = vmov 0   ;;  %v1775_v2 = vmov 1   ;;  %s2240_s0 = inlined_call_operand.vmem [shape: f32[8,5], index: 0, kind: input, shape index: {}]   ;;  %s2241_s1 = inlined_call_operand.vmem [shape: s32[8,5], index: 1, kind: input, shape index: {}]   ;;  %s2242_s2 = inlined_call_operand.vmem [shape: bf16[5,1024], index: 2, kind: input, shape index: {}]   ;;  %s2243_s3 = inlined_call_operand.vmem [shape: bf16[24,1024], index: 3, kind: input, shape index: {}]   ;;  %s2244_s4 = inlined_call_operand.vmem [shape: f32[1,1024], index: 4, kind: input, shape index: {}]   ;;  %s2245_s5 = inlined_call_operand.vmem [shape: bf16[1024,64], index: 5, kind: input, shape index: {}]   ;;  %s2246_s6 = inlined_call_operand.vmem [shape: f32[1,64], index: 6, kind: input, shape index: {}]   ;;  %s2247_s7 = inlined_call_operand.vmem [shape: bf16[64,64], index: 7, kind: input, shape index: {}]   ;;  %s2248_s8 = inlined_call_operand.vmem [shape: f32[1,64], index: 8, kind: input, shape index: {}]   ;;  %s2249_s9 = inlined_call_operand.vmem [shape: bf16[64,64], index: 9, kind: input, shape index: {}]   ;;  %s2250_s10 = inlined_call_operand.vmem [shape: f32[1,64], index: 10, kind: input, shape index: {}]   ;;  %s2251_s11 = inlined_call_operand.hbm [shape: f32[8,64], index: 11, kind: output, shape index: {}]  }
   0x1   :  { %v40_v0 = vld [vmem:[%s2241_s1] sm:$0xff]  ;;  %1712 = vset.pattern.permute.xlu0 %v1774_v1  ;;  %1713 = vset.pattern.permute.xlu1 %v1775_v2 }
   0x2   :  { %v61_v3 = vadd.s32 11, %v40_v0  ;;  %vm54_vm0 = vcmp.lt.s32.totalorder %v40_v0, 11  ;;  %44 = vperm.xlu0 %1712, %v40_v0   ;;  %1714 = vset.pattern.permute.xlu2 %v1774_v1 }
   0x3   :  { %v55_v4 = vsel %vm54_vm0, 1, %v1774_v1 }
   0x4   :  { %63 = vperm.xlu1 %1713, %v61_v3   ;;  %57 = vperm.xlu2 %1714, %v55_v4  }
   0x5   :  { %16 = vsyncpa [#allocation3], 0  ;;  %vm47_vm1 = vcmp.ge.s32.totalorder %v40_v0, 0  ;;  %vm71_vm2 = vcmp.lt.s32.totalorder %v40_v0, 2  ;;  %v79_v7 = vadd.s32 13, %v40_v0  ;;  %vm89_vm3 = vcmp.lt.s32.totalorder %v40_v0, 7 }
   0x6   :  { %v48_v5 = vsel %vm47_vm1, 1, %v1774_v1  ;;  %v72_v6 = vsel %vm71_vm2, 1, %v1774_v1  ;;  %v1776_v8 = vmov 2   ;;  %v90_v9 = vsel %vm89_vm3, 1, %v1774_v1  ;;  %v145_v16 = vld [vmem:[%s2243_s3 + $0x40] sm:$0xff]  ;;  %v146_v17 = vld [vmem:[%s2243_s3 + $0x48] sm:$0xff] }
   0x7   :  { %v97_v10 = vadd.s32 20, %v40_v0  ;;  %v1777_v11 = vmov 3   ;;  %v113_v12 = vadd.s32 22, %v40_v0  ;;  %v1778_v13 = vmov 4   ;;  %v1288_v33 = vld [vmem:[%s2243_s3] sm:$0xf] }
   0x8   :  { %v177_v18 = vunpack.c.l.b16 %v145_v16  ;;  %v178_v19 = vunpack.c.h.b16 %v145_v16  ;;  %v179_v20 = vunpack.c.l.b16 %v146_v17  ;;  %v180_v21 = vunpack.c.h.b16 %v146_v17  ;;  %v1628_v34 = vld [vmem:[%s2243_s3 + $0x1c] sm:$0xf0]  ;;  %v1624_v36 = vld [vmem:[%s2243_s3 + $0x4] sm:$0xf]  ;;  %v1296_v38 = vld [vmem:[%s2243_s3 + $0x8] sm:$0xf] }
   0x9   :  { %vm213_vm4 = vcmask 1043456   ;;  %v1289_v35 = vor.u32 %v1628_v34, %v1288_v33  ;;  %v1290_v37 = vld [vmem:[%s2243_s3 + $0x20] sm:$0xf0]  ;;  %v1629_v40 = vld [vmem:[%s2243_s3 + $0x24] sm:$0xf0]  ;;  %v148_v48 = vld [vmem:[%s2243_s3 + $0x58] sm:$0xff]  ;;  %v41_v54 = vlaneseq }
   0xa   :  { %50 = vperm.xlu0 %1712, %v48_v5   ;;  %v193_v25 = vpack.c.b16 %v177_v18, %v177_v18  ;;  %v194_v26 = vpack.c.b16 %v178_v19, %v178_v19  ;;  %v195_v27 = vpack.c.b16 %v179_v20, %v179_v20  ;;  %v196_v28 = vpack.c.b16 %v180_v21, %v180_v21  ;;  %v1625_v41 = vld [vmem:[%s2243_s3 + $0xc] sm:$0xf]  ;;  %v147_v49 = vld [vmem:[%s2243_s3 + $0x50] sm:$0xff]  ;;  %v1312_v55 = vld [vmem:[%s2243_s3 + $0x18] sm:$0xf]  ;;  %s1781_s16 = smov [#allocation2]  }
   0xb   :  { %v1293_v39 = vor.u32 %v1624_v36, %v1290_v37  ;;  %v1298_v42 = vld [vmem:[%s2243_s3 + $0x28] sm:$0xf0]  ;;  %v1297_v43 = vor.u32 %v1629_v40, %v1296_v38  ;;  %v183_v50 = vunpack.c.l.b16 %v148_v48  ;;  %v184_v51 = vunpack.c.h.b16 %v148_v48  ;;  %v1631_v56 = vld [vmem:[%s2243_s3 + $0x34] sm:$0xf0]  ;;  %v1627_v61 = vld [vmem:[%s2243_s3 + $0x1c] sm:$0xf] }
   0xc   :  { %67 = vperm.xlu1 %1713, %v48_v5   ;;  %1715 = vset.pattern.permute.xlu2 %v1775_v2  ;;  %v215_v29 = vsel %vm213_vm4, %v193_v25, 0  ;;  %v218_v30 = vsel %vm213_vm4, %v194_v26, 0  ;;  %v221_v31 = vsel %vm213_vm4, %v195_v27, 0  ;;  %v224_v32 = vsel %vm213_vm4, %v196_v28, 0  ;;  %v1314_v62 = vld [vmem:[%s2243_s3 + $0x38] sm:$0xf0] }
   0xd   :  { %74 = vperm.xlu2 %1715, %v72_v6   ;;  %244 = vmatpush.bf16.msra.mxu0 %v215_v29  ;;  %v1301_v44 = vor.u32 %v1625_v41, %v1298_v42  ;;  %v181_v52 = vunpack.c.l.b16 %v147_v49  ;;  %v182_v53 = vunpack.c.h.b16 %v147_v49  ;;  %v199_v57 = vpack.c.b16 %v183_v50, %v183_v50  ;;  %v1304_v63 = vld [vmem:[%s2243_s3 + $0x10] sm:$0xf]  ;;  %v1626_v1 = vld [vmem:[%s2243_s3 + $0x14] sm:$0xf]  ;;  %v133_v20 = vld [vmem:[%s2242_s2] sm:$0x77] }
   0xe   :  { %257 = vmatpush.bf16.msra.mxu1 %v218_v30  ;;  %270 = vmatpush.bf16.msra.mxu2 %v221_v31  ;;  %v200_v58 = vpack.c.b16 %v184_v51, %v184_v51  ;;  %v1630_v0 = vld [vmem:[%s2243_s3 + $0x2c] sm:$0xf0]  ;;  %v1306_v2 = vld [vmem:[%s2243_s3 + $0x30] sm:$0xf0]  ;;  %v347_v25 = vunpack.c.h.b16 %v133_v20  ;;  %v1779_v27 = vmov 65535   ;;  %v1659_v17 = vld [vmem:[%s2245_s5 + $0xd8] sm:$0xff] }
   0xf   :  { %283 = vmatpush.bf16.msra.mxu3 %v224_v32  ;;  %v197_v59 = vpack.c.b16 %v181_v52, %v181_v52  ;;  %v198_v60 = vpack.c.b16 %v182_v53, %v182_v53  ;;  %v233_v3 = vsel %vm213_vm4, %v199_v57, 0  ;;  %v136_v42 = vld [vmem:[%s2242_s2 + $0x18] sm:$0x77]  ;;  %v1640_v21 = vld [vmem:[%s2245_s5 + $0x40] sm:$0xff]  ;;  %s1277_s18 = sshll.u32 %s2251_s11, 4  ;;  %s1278_s18 = int_to_ptr.hbm [resolvable:$true] %s1277_s18 }
  0x10   :  { %v236_v4 = vsel %vm213_vm4, %v200_v58, 0  ;;  %v355_v34 = vpack.c.b16 %v347_v25, %v347_v25  ;;  %v1639_v58 = vld [vmem:[%s2245_s5 + $0x38] sm:$0xff]  ;;  %v1657_v25 = vld [vmem:[%s2245_s5 + $0xc8] sm:$0xff] }
  0x11   :  { %245 = vmatpush.bf16.msra.mxu0 %v1289_v35  ;;  %v1780_v35 = vmov 0.0  }
  0x12   :  { %1716 = vset.pattern.permute.xlu0 %v1776_v8  ;;  %258 = vmatpush.bf16.msra.mxu1 %v1293_v39 }
  0x13   :  { %81 = vperm.xlu0 %1716, %v79_v7   ;;  %271 = vmatpush.bf16.msra.mxu2 %v1297_v43  ;;  %v1313_v7 = vor.u32 %v1631_v56, %v1312_v55  ;;  %v135_v43 = vld [vmem:[%s2242_s2 + $0x10] sm:$0x77]  ;;  %v131_v56 = vld [vmem:[%s2240_s0] sm:$0xff] }
  0x14   :  { %1717 = vset.pattern.permute.xlu1 %v1776_v8  ;;  %284 = vmatpush.bf16.msra.mxu3 %v1301_v44  ;;  %v352_v44 = vunpack.c.l.b16 %v136_v42  ;;  %v132_v57 = vpack.c.bf16 %v131_v56, %v131_v56  ;;  %v1683_v56 = vld [vmem:[%s2245_s5 + $0x198] sm:$0xff] }
  0x15   :  { %85 = vperm.xlu1 %1717, %v48_v5   ;;  %1718 = vset.pattern.permute.xlu2 %v1776_v8  ;;  %v1317_v8 = vor.u32 %v1627_v61, %v1314_v62  ;;  %v1646_v61 = vld [vmem:[%s2245_s5 + $0x70] sm:$0xff]  ;;  %v1655_v62 = vld [vmem:[%s2245_s5 + $0xb8] sm:$0xff] }
  0x16   :  { %92 = vperm.xlu2 %1718, %v90_v9   ;;  %v42_v9 = vand.u32 127, %v41_v54  ;;  %v360_v48 = vpack.c.b16 %v352_v44, %v352_v44  ;;  %v1685_v44 = vld [vmem:[%s2245_s5 + $0x1a8] sm:$0xff] }
  0x17   :  { %322 = vmatpush.bf16.msrb.mxu2 %v233_v3  ;;  %v1662_v3 = vld [vmem:[%s2245_s5 + $0xf0] sm:$0xff] }
  0x18   :  { %335 = vmatpush.bf16.msrb.mxu3 %v236_v4  ;;  %v1636_v4 = vld [vmem:[%s2245_s5 + $0x20] sm:$0xff] }
  0x1b   :  { %1721 = vset.pattern.permute.xlu0 %v1777_v11  ;;  %323 = vmatpush.bf16.msrb.mxu2 %v1313_v7  ;;  %v1661_v7 = vld [vmem:[%s2245_s5 + $0xe8] sm:$0xff] }
  0x1c   :  { %108 = vperm.xlu0 %1721, %v72_v6   ;;  %336 = vmatpush.bf16.msrb.mxu3 %v1317_v8  ;;  %v1635_v8 = vld [vmem:[%s2245_s5 + $0x18] sm:$0xff] }
  0x1d   :  { %1719 = vset.pattern.permute.xlu1 %v1777_v11 }
  0x1e   :  { %99 = vperm.xlu1 %1719, %v97_v10   ;;  %1720 = vset.pattern.permute.xlu2 %v1777_v11 }
  0x1f   :  { %103 = vperm.xlu2 %1720, %v48_v5  }
  0x24   :  { %1724 = vset.pattern.permute.xlu0 %v1778_v13 }
  0x26   :  { %1722 = vset.pattern.permute.xlu1 %v1778_v13 }
  0x27   :  { %115 = vperm.xlu1 %1722, %v113_v12   ;;  %1723 = vset.pattern.permute.xlu2 %v1778_v13  ;;  %v1305_v12 = vor.u32 %v1630_v0, %v1304_v63  ;;  %v1309_v13 = vor.u32 %v1626_v1, %v1306_v2  ;;  %v1663_v63 = vld [vmem:[%s2245_s5 + $0xf8] sm:$0xff]  ;;  %v1637_v0 = vld [vmem:[%s2245_s5 + $0x28] sm:$0xff]  ;;  %v1654_v2 = vld [vmem:[%s2245_s5 + $0xb0] sm:$0xff] }
  0x28   :  { %119 = vperm.xlu2 %1723, %v48_v5   ;;  %v227_v5 = vsel %vm213_vm4, %v197_v59, 0  ;;  %v1647_v59 = vld [vmem:[%s2245_s5 + $0x78] sm:$0xff]  ;;  %v1645_v1 = vld [vmem:[%s2245_s5 + $0x68] sm:$0xff] }
  0x29   :  { %296 = vmatpush.bf16.msrb.mxu0 %v227_v5  ;;  %v1644_v5 = vld [vmem:[%s2245_s5 + $0x60] sm:$0xff] }
  0x2d   :  { %297 = vmatpush.bf16.msrb.mxu0 %v1305_v12  ;;  %v1634_v12 = vld [vmem:[%s2245_s5 + $0x10] sm:$0xff] }
  0x2f   :  { %124 = vperm.xlu1 %1722, %v72_v6   ;;  %v230_v6 = vsel %vm213_vm4, %v198_v60, 0  ;;  %v1638_v60 = vld [vmem:[%s2245_s5 + $0x30] sm:$0xff] }
  0x30   :  { %309 = vmatpush.bf16.msrb.mxu1 %v230_v6  ;;  %v1653_v6 = vld [vmem:[%s2245_s5 + $0xa8] sm:$0xff] }
  0x34   :  { %310 = vmatpush.bf16.msrb.mxu1 %v1309_v13  ;;  %v1642_v13 = vld [vmem:[%s2245_s5 + $0x50] sm:$0xff] }
  0x5e   :  { %v1845_v14 = vpop.permute.xlu2 %57 }
  0x5f   :  { %vm59_vm9 = vcmp.eq.s32.totalorder %v1845_v14, 1  ;;  %v134_v14 = vld [vmem:[%s2242_s2 + $0x8] sm:$0x77] }
  0x67   :  { %v1855_v22 = vpop.permute.xlu2 %74 }
  0x68   :  { %vm76_vm1 = vcmp.eq.s32.totalorder %v1855_v22, 1  ;;  %v348_v22 = vunpack.c.l.b16 %v134_v14 }
  0x6a   :  { %v356_v30 = vpack.c.b16 %v348_v22, %v348_v22  ;;  %v1671_v22 = vld [vmem:[%s2245_s5 + $0x138] sm:$0xff] }
  0x70   :  { %v1889_v47 = vpop.permute.xlu2 %92 }
  0x71   :  { %vm94_vm3 = vcmp.eq.s32.totalorder %v1889_v47, 1  ;;  %v351_v47 = vunpack.c.h.b16 %v135_v43 }
  0x73   :  { %v359_v51 = vpack.c.b16 %v351_v47, %v351_v47 }
  0x74   :  { %v1857_v23 = vpop.permute.xlu0 %44 }
  0x75   :  { %vm46_vm5 = vcmp.eq.s32.totalorder %v42_v9, %v1857_v23  ;;  %v349_v23 = vunpack.c.h.b16 %v134_v14  ;;  %v1650_v14 = vld [vmem:[%s2245_s5 + $0x90] sm:$0xff] }
  0x76   :  { %v1847_v15 = vpop.permute.xlu1 %63 }
  0x77   :  { %vm65_vm12 = vcmp.eq.s32.totalorder %v42_v9, %v1847_v15  ;;  %v357_v31 = vpack.c.b16 %v349_v23, %v349_v23  ;;  %v1679_v23 = vld [vmem:[%s2245_s5 + $0x178] sm:$0xff] }
  0x79   :  { %v104_v16 = vpop.permute.xlu2 %103 }
  0x7a   :  { %vm105_vm14 = vcmp.eq.s32.totalorder %v104_v16, 1  ;;  %v1651_v16 = vld [vmem:[%s2245_s5 + $0x98] sm:$0xff] }
  0x7c   :  { %v51_v46 = vpop.permute.xlu0 %50 }
  0x7d   :  { %vm52_vm6 = vcmp.eq.s32.totalorder %v51_v46, 1  ;;  %v350_v46 = vunpack.c.l.b16 %v135_v43  ;;  %v1676_v43 = vld [vmem:[%s2245_s5 + $0x160] sm:$0xff] }
  0x7e   :  { %v1859_v24 = vpop.permute.xlu1 %67  ;;  %vm53_vm7 = vmand %vm46_vm5, %vm52_vm6 }
  0x7f   :  { %vm69_vm8 = vcmp.eq.s32.totalorder %v1859_v24, 1  ;;  %vm1929_vm13 = vmand %vm53_vm7, %vm59_vm9  ;;  %v346_v24 = vunpack.c.l.b16 %v133_v20  ;;  %v358_v50 = vpack.c.b16 %v350_v46, %v350_v46  ;;  %v1632_v20 = vld [vmem:[%s2245_s5] sm:$0xff] }
  0x80   :  { %vm70_vm0 = vmand %vm65_vm12, %vm69_vm8  ;;  %vm366_vm8 = vcmask 1041408  }
  0x81   :  { %vm77_vm6 = vmand %vm70_vm0, %vm76_vm1  ;;  %v368_v28 = vsel %vm366_vm8, 4294967295, %v1779_v27  ;;  %v354_v33 = vpack.c.b16 %v346_v24, %v346_v24  ;;  %v1649_v24 = vld [vmem:[%s2245_s5 + $0x88] sm:$0xff] }
  0x82   :  { %v120_v15 = vpop.permute.xlu2 %119 }
  0x85   :  { %v82_v10 = vpop.permute.xlu0 %81 }
  0x86   :  { %vm83_vm11 = vcmp.eq.s32.totalorder %v42_v9, %v82_v10  ;;  %v1652_v10 = vld [vmem:[%s2245_s5 + $0xa0] sm:$0xff] }
  0x87   :  { %v86_v45 = vpop.permute.xlu1 %85 }
  0x88   :  { %vm87_vm10 = vcmp.eq.s32.totalorder %v86_v45, 1  ;;  %v353_v45 = vunpack.c.h.b16 %v136_v42  ;;  %v1668_v42 = vld [vmem:[%s2245_s5 + $0x120] sm:$0xff] }
  0x89   :  { %vm88_vm2 = vmand %vm83_vm11, %vm87_vm10  ;;  %vm121_vm11 = vcmp.eq.s32.totalorder %v120_v15, 1  ;;  %v1658_v15 = vld [vmem:[%s2245_s5 + $0xd0] sm:$0xff] }
  0x8a   :  { %vm95_vm7 = vmand %vm88_vm2, %vm94_vm3  ;;  %v361_v49 = vpack.c.b16 %v353_v45, %v353_v45  ;;  %v1693_v45 = vld [vmem:[%s2245_s5 + $0x1e8] sm:$0xff] }
  0x8b   :  { %vm78_vm10 = vmor %vm1929_vm13, %vm77_vm6  ;;  %vm1198_vm6 = vcmask 523264  }
  0x8e   :  { %v109_v18 = vpop.permute.xlu0 %108 }
  0x8f   :  { %vm110_vm5 = vcmp.eq.s32.totalorder %v109_v18, 1  ;;  %v1633_v18 = vld [vmem:[%s2245_s5 + $0x8] sm:$0xff] }
  0x90   :  { %v100_v11 = vpop.permute.xlu1 %99 }
  0x91   :  { %vm101_vm15 = vcmp.eq.s32.totalorder %v42_v9, %v100_v11  ;;  %v1660_v11 = vld [vmem:[%s2245_s5 + $0xe0] sm:$0xff] }
  0x92   :  { %vm106_vm4 = vmand %vm101_vm15, %vm105_vm14  ;;  %vm367_vm15 = vcmask 1042432  }
  0x93   :  { %vm1941_vm9 = vmand %vm106_vm4, %vm110_vm5  ;;  %v369_v32 = vsel %vm367_vm15, %v368_v28, 0  ;;  %vm209_vm4 = vcmask 195584   ;;  %vm362_vm5 = vcmask 39936   ;;  %v1670_v28 = vld [vmem:[%s2245_s5 + $0x130] sm:$0xff] }
  0x94   :  { %vm1947_vm14 = vmor %vm78_vm10, %vm95_vm7  ;;  %v377_v38 = vand.u32 %v369_v32, %v356_v30  ;;  %v380_v39 = vand.u32 %v369_v32, %v357_v31  ;;  %v371_v40 = vand.u32 %v369_v32, %v354_v33  ;;  %v374_v41 = vand.u32 %v369_v32, %v355_v34  ;;  %v1648_v30 = vld [vmem:[%s2245_s5 + $0x80] sm:$0xff]  ;;  %v1695_v33 = vld [vmem:[%s2245_s5 + $0x1f8] sm:$0xff] }
  0x95   :  { %vm112_vm0 = vmor %vm1947_vm14, %vm1941_vm9  ;;  %v389_v52 = vand.u32 %v369_v32, %v360_v48  ;;  %v392_v53 = vand.u32 %v369_v32, %v361_v49  ;;  %v383_v54 = vand.u32 %v369_v32, %v358_v50  ;;  %v386_v55 = vand.u32 %v369_v32, %v359_v51  ;;  %v1656_v31 = vld [vmem:[%s2245_s5 + $0xc0] sm:$0xff]  ;;  %v1687_v32 = vld [vmem:[%s2245_s5 + $0x1b8] sm:$0xff] }
  0x96   :  { %v1667_v48 = vld [vmem:[%s2245_s5 + $0x118] sm:$0xff] }
  0x97   :  { %v1675_v49 = vld [vmem:[%s2245_s5 + $0x158] sm:$0xff] }
  0x99   :  { %v116_v19 = vpop.permute.xlu1 %115 }
  0x9a   :  { %vm117_vm12 = vcmp.eq.s32.totalorder %v42_v9, %v116_v19  ;;  %v1643_v9 = vld [vmem:[%s2245_s5 + $0x58] sm:$0xff]  ;;  %v1641_v19 = vld [vmem:[%s2245_s5 + $0x48] sm:$0xff] }
  0x9b   :  { %vm122_vm1 = vmand %vm117_vm12, %vm121_vm11 }
  0xa1   :  { %v125_v29 = vpop.permute.xlu1 %124 }
  0xa2   :  { %vm126_vm2 = vcmp.eq.s32.totalorder %v125_v29, 1  ;;  %v1678_v29 = vld [vmem:[%s2245_s5 + $0x170] sm:$0xff] }
  0xa3   :  { %vm127_vm13 = vmand %vm122_vm1, %vm126_vm2 }
  0xa4   :  { %vm128_vm3 = vmor %vm112_vm0, %vm127_vm13 }
  0xa5   :  { %v129_v36 = vsel %vm128_vm3, 1.0, %v1780_v35 }
  0xa6   :  { %v130_v37 = vpack.c.bf16 %v129_v36, %v129_v36  ;;  %v1669_v36 = vld [vmem:[%s2245_s5 + $0x128] sm:$0xff] }
  0xa8   :  { %1318 = vmatmul.msk.bf16.vlgmr.msra.gmra.mxu0 %vm209_vm4, %v130_v37  ;;  %1319 = vmatmul.msk.bf16.vlgmr.msra.gmra.mxu1 %vm209_vm4, %v130_v37 }
  0xa9   :  { %1320 = vmatmul.msk.bf16.vlgmr.msra.gmra.mxu2 %vm209_vm4, %v130_v37  ;;  %1321 = vmatmul.msk.bf16.vlgmr.msra.gmra.mxu3 %vm209_vm4, %v130_v37 }
  0xaa   :  { %427 = vmatpush.bf16.msra.mxu2 %v377_v38  ;;  %440 = vmatpush.bf16.msra.mxu3 %v380_v39 }
  0xab   :  { %401 = vmatpush.bf16.msra.mxu0 %v371_v40  ;;  %414 = vmatpush.bf16.msra.mxu1 %v374_v41  ;;  %v1686_v40 = vld [vmem:[%s2245_s5 + $0x1b0] sm:$0xff] }
  0xac   :  { %v1694_v41 = vld [vmem:[%s2245_s5 + $0x1f0] sm:$0xff] }
  0xb8   :  { %1322 = vmatmul.msk.bf16.vlgmr.msrb.gmra.mxu0 %vm209_vm4, %v130_v37  ;;  %1323 = vmatmul.msk.bf16.vlgmr.msrb.gmra.mxu1 %vm209_vm4, %v130_v37 }
  0xb9   :  { %1324 = vmatmul.msk.bf16.vlgmr.msrb.gmra.mxu2 %vm209_vm4, %v130_v37  ;;  %1325 = vmatmul.msk.bf16.vlgmr.msrb.gmra.mxu3 %vm209_vm4, %v130_v37  ;;  %v1677_v37 = vld [vmem:[%s2245_s5 + $0x168] sm:$0xff] }
  0xba   :  { %479 = vmatpush.bf16.msrb.mxu2 %v389_v52  ;;  %492 = vmatpush.bf16.msrb.mxu3 %v392_v53  ;;  %v1684_v52 = vld [vmem:[%s2245_s5 + $0x1a0] sm:$0xff] }
  0xbb   :  { %453 = vmatpush.bf16.msrb.mxu0 %v383_v54  ;;  %466 = vmatpush.bf16.msrb.mxu1 %v386_v55  ;;  %v1692_v53 = vld [vmem:[%s2245_s5 + $0x1e0] sm:$0xff]  ;;  %v1666_v54 = vld [vmem:[%s2245_s5 + $0x110] sm:$0xff] }
  0xbc   :  { %v1674_v55 = vld [vmem:[%s2245_s5 + $0x150] sm:$0xff] }
  0xc8   :  { %1326 = vmatmul.msk.bf16.vlgmr.msra.gmra.mxu0 %vm362_vm5, %v132_v57  ;;  %1327 = vmatmul.msk.bf16.vlgmr.msra.gmra.mxu1 %vm362_vm5, %v132_v57 }
  0xc9   :  { %1328 = vmatmul.msk.bf16.vlgmr.msra.gmra.mxu2 %vm362_vm5, %v132_v57  ;;  %1329 = vmatmul.msk.bf16.vlgmr.msra.gmra.mxu3 %vm362_vm5, %v132_v57 }
  0xca   :  { %1056 = vmatpush.bf16.msra.mxu0 %v1639_v58  ;;  %1069 = vmatpush.bf16.msra.mxu1 %v1647_v59 }
  0xcb   :  { %1082 = vmatpush.bf16.msra.mxu2 %v1655_v62  ;;  %1095 = vmatpush.bf16.msra.mxu3 %v1663_v63 }
  0xce   :  { %1057 = vmatpush.bf16.msra.mxu0 %v1638_v60  ;;  %1070 = vmatpush.bf16.msra.mxu1 %v1646_v61  ;;  %v1665_v60 = vld [vmem:[%s2245_s5 + $0x108] sm:$0xff] }
  0xcf   :  { %1083 = vmatpush.bf16.msra.mxu2 %v1654_v2  ;;  %1096 = vmatpush.bf16.msra.mxu3 %v1662_v3  ;;  %v1673_v61 = vld [vmem:[%s2245_s5 + $0x148] sm:$0xff]  ;;  %v1664_v2 = vld [vmem:[%s2245_s5 + $0x100] sm:$0xff] }
  0xd0   :  { %v1672_v3 = vld [vmem:[%s2245_s5 + $0x140] sm:$0xff] }
  0xd2   :  { %1058 = vmatpush.bf16.msra.mxu0 %v1637_v0  ;;  %1071 = vmatpush.bf16.msra.mxu1 %v1645_v1  ;;  %v1682_v0 = vld [vmem:[%s2245_s5 + $0x190] sm:$0xff] }
  0xd3   :  { %1084 = vmatpush.bf16.msra.mxu2 %v1653_v6  ;;  %1097 = vmatpush.bf16.msra.mxu3 %v1661_v7  ;;  %v1690_v1 = vld [vmem:[%s2245_s5 + $0x1d0] sm:$0xff]  ;;  %v1689_v6 = vld [vmem:[%s2245_s5 + $0x1c8] sm:$0xff] }
  0xd6   :  { %1059 = vmatpush.bf16.msra.mxu0 %v1636_v4  ;;  %1072 = vmatpush.bf16.msra.mxu1 %v1644_v5  ;;  %v2171_v4 = vld [vmem:[%s2244_s4] sm:$0xff]  ;;  %v1681_v5 = vld [vmem:[%s2245_s5 + $0x188] sm:$0xff]  ;;  %s1275_s4 = sshll.u32 %s1781_s16, 4  ;;  %s1276_s4 = int_to_ptr.vmem [resolvable:$true] %s1275_s4 }
  0xd7   :  { %1085 = vmatpush.bf16.msra.mxu2 %v1652_v10  ;;  %1098 = vmatpush.bf16.msra.mxu3 %v1660_v11  ;;  %v501_v10 = vperm.slane %v2171_v4, 1 }
  0xd8   :  { %1330 = vmatmul.msk.bf16.vlgmr.msrb.gmra.mxu0 %vm362_vm5, %v132_v57  ;;  %1331 = vmatmul.msk.bf16.vlgmr.msrb.gmra.mxu1 %vm362_vm5, %v132_v57 }
  0xd9   :  { %1332 = vmatmul.msk.bf16.vlgmr.msrb.gmra.mxu2 %vm362_vm5, %v132_v57  ;;  %1333 = vmatmul.msk.bf16.vlgmr.msrb.gmra.mxu3 %vm362_vm5, %v132_v57  ;;  %v1691_v57 = vld [vmem:[%s2245_s5 + $0x1d8] sm:$0xff] }
  0xda   :  { %1060 = vmatpush.bf16.msra.mxu0 %v1635_v8  ;;  %1073 = vmatpush.bf16.msra.mxu1 %v1643_v9  ;;  %v500_v9 = vperm.slane %v2171_v4, 0 }
  0xdb   :  { %1086 = vmatpush.bf16.msra.mxu2 %v1651_v16  ;;  %1099 = vmatpush.bf16.msra.mxu3 %v1659_v17  ;;  %v1680_v17 = vld [vmem:[%s2245_s5 + $0x180] sm:$0xff] }
  0xde   :  { %1061 = vmatpush.bf16.msra.mxu0 %v1634_v12  ;;  %1074 = vmatpush.bf16.msra.mxu1 %v1642_v13 }
  0xdf   :  { %1087 = vmatpush.bf16.msra.mxu2 %v1650_v14  ;;  %1100 = vmatpush.bf16.msra.mxu3 %v1658_v15  ;;  %v502_v15 = vperm.slane %v2171_v4, 2 }
  0xe2   :  { %1062 = vmatpush.bf16.msra.mxu0 %v1633_v18  ;;  %1075 = vmatpush.bf16.msra.mxu1 %v1641_v19  ;;  %v1688_v18 = vld [vmem:[%s2245_s5 + $0x1c0] sm:$0xff] }
  0xe3   :  { %1088 = vmatpush.bf16.msra.mxu2 %v1649_v24  ;;  %1101 = vmatpush.bf16.msra.mxu3 %v1657_v25 }
  0xe6   :  { %1063 = vmatpush.bf16.msra.mxu0 %v1632_v20  ;;  %1076 = vmatpush.bf16.msra.mxu1 %v1640_v21  ;;  %v503_v20 = vperm.slane %v2171_v4, 3 }
  0xe7   :  { %1089 = vmatpush.bf16.msra.mxu2 %v1648_v30  ;;  %1102 = vmatpush.bf16.msra.mxu3 %v1656_v31 }
  0xea   :  { %1108 = vmatpush.bf16.msrb.mxu0 %v1671_v22  ;;  %1121 = vmatpush.bf16.msrb.mxu1 %v1679_v23 }
  0xeb   :  { %1134 = vmatpush.bf16.msrb.mxu2 %v1687_v32  ;;  %1147 = vmatpush.bf16.msrb.mxu3 %v1695_v33 }
  0xee   :  { %1109 = vmatpush.bf16.msrb.mxu0 %v1670_v28  ;;  %1122 = vmatpush.bf16.msrb.mxu1 %v1678_v29 }
  0xef   :  { %1135 = vmatpush.bf16.msrb.mxu2 %v1686_v40  ;;  %1148 = vmatpush.bf16.msrb.mxu3 %v1694_v41 }
  0xf2   :  { %1110 = vmatpush.bf16.msrb.mxu0 %v1669_v36  ;;  %1123 = vmatpush.bf16.msrb.mxu1 %v1677_v37  ;;  %v504_v37 = vperm.slane %v2171_v4, 4 }
  0xf3   :  { %1136 = vmatpush.bf16.msrb.mxu2 %v1685_v44  ;;  %1149 = vmatpush.bf16.msrb.mxu3 %v1693_v45 }
  0xf6   :  { %1111 = vmatpush.bf16.msrb.mxu0 %v1668_v42  ;;  %1124 = vmatpush.bf16.msrb.mxu1 %v1676_v43 }
  0xf7   :  { %1137 = vmatpush.bf16.msrb.mxu2 %v1684_v52  ;;  %1150 = vmatpush.bf16.msrb.mxu3 %v1692_v53 }
  0xfa   :  { %1112 = vmatpush.bf16.msrb.mxu0 %v1667_v48  ;;  %1125 = vmatpush.bf16.msrb.mxu1 %v1675_v49  ;;  %v507_v48 = vperm.slane %v2171_v4, 7 }
  0xfb   :  { %1138 = vmatpush.bf16.msrb.mxu2 %v1683_v56  ;;  %1151 = vmatpush.bf16.msrb.mxu3 %v1691_v57 }
  0xfe   :  { %1113 = vmatpush.bf16.msrb.mxu0 %v1666_v54  ;;  %1126 = vmatpush.bf16.msrb.mxu1 %v1674_v55 }
  0xff   :  { %1139 = vmatpush.bf16.msrb.mxu2 %v1682_v0  ;;  %1152 = vmatpush.bf16.msrb.mxu3 %v1690_v1 }
 0x102   :  { %1114 = vmatpush.bf16.msrb.mxu0 %v1665_v60  ;;  %1127 = vmatpush.bf16.msrb.mxu1 %v1673_v61 }
 0x103   :  { %1140 = vmatpush.bf16.msrb.mxu2 %v1681_v5  ;;  %1153 = vmatpush.bf16.msrb.mxu3 %v1689_v6 }
 0x106   :  { %1115 = vmatpush.bf16.msrb.mxu0 %v1664_v2  ;;  %1128 = vmatpush.bf16.msrb.mxu1 %v1672_v3 }
 0x107   :  { %1141 = vmatpush.bf16.msrb.mxu2 %v1680_v17  ;;  %1154 = vmatpush.bf16.msrb.mxu3 %v1688_v18 }
 0x125   :  { %v2068_v26 = vpop.f32.mrf.mxu0  ;;  %v2070_v27 = vpop.f32.mrf.mxu1 }
 0x12c   :  { %v2090_v34 = vpop.f32.mrf.mxu2  ;;  %v2092_v35 = vpop.f32.mrf.mxu3 }
 0x12d   :  { %v249_v38 = vpop.f32.mrf.mxu0  ;;  %v262_v39 = vpop.f32.mrf.mxu1 }
 0x134   :  { %v275_v46 = vpop.f32.mrf.mxu2  ;;  %v288_v47 = vpop.f32.mrf.mxu3 }
 0x135   :  { %v2124_v50 = vpop.f32.mrf.mxu0  ;;  %v2126_v51 = vpop.f32.mrf.mxu1  ;;  %v506_v47 = vperm.slane %v2171_v4, 6 }
 0x13c   :  { %v2146_v58 = vpop.f32.mrf.mxu2  ;;  %v2148_v59 = vpop.f32.mrf.mxu3 }
 0x13d   :  { %v301_v62 = vpop.f32.mrf.mxu0  ;;  %v314_v63 = vpop.f32.mrf.mxu1 }
 0x144   :  { %v327_v7 = vpop.f32.mrf.mxu2  ;;  %v340_v8 = vpop.f32.mrf.mxu3 }
 0x145   :  { %v403_v11 = vpop.f32.mrf.mxu0  ;;  %v416_v12 = vpop.f32.mrf.mxu1  ;;  %v1697_v7 = vld [vmem:[%s2247_s7 + $0x8] sm:$0xff]  ;;  %v1725_v8 = vld [vmem:[%s2246_s6] ss:$0 sm:$0xff] }
 0x146   :  { %v404_v13 = vadd.f32 %v403_v11, %v2068_v26  ;;  %v417_v16 = vadd.f32 %v416_v12, %v2070_v27 }
 0x148   :  { %v516_v19 = vadd.f32 %v500_v9, %v404_v13  ;;  %v517_v14 = vadd.f32 %v501_v10, %v417_v16  ;;  %v1696_v9 = vld [vmem:[%s2247_s7] sm:$0xff]  ;;  %v1703_v13 = vld [vmem:[%s2249_s9 + $0x18] sm:$0xff] }
 0x14a   :  { %1728 = vtanh.f32 %v516_v19 }
 0x14b   :  { %1730 = vtanh.f32 %v517_v14 }
 0x14c   :  { %v429_v21 = vpop.f32.mrf.mxu2  ;;  %v442_v22 = vpop.f32.mrf.mxu3 }
 0x14d   :  { %v430_v23 = vadd.f32 %v429_v21, %v2090_v34  ;;  %v443_v24 = vadd.f32 %v442_v22, %v2092_v35  ;;  %v405_v25 = vpop.f32.mrf.mxu0  ;;  %v418_v26 = vpop.f32.mrf.mxu1  ;;  %v505_v34 = vperm.slane %v2171_v4, 5  ;;  %v1698_v4 = vld [vmem:[%s2247_s7 + $0x10] sm:$0xff] }
 0x14f   :  { %v518_v27 = vadd.f32 %v502_v15, %v430_v23  ;;  %v519_v28 = vadd.f32 %v503_v20, %v443_v24 }
 0x150   :  { %v1729_v29 = vpop.eup %1728 }
 0x151   :  { %v1731_v30 = vpop.eup %1730  ;;  %v532_v31 = vpack.c.bf16 %v1729_v29, %v1729_v29  ;;  %1732 = vtanh.f32 %v518_v27 }
 0x152   :  { %v533_v32 = vpack.c.bf16 %v1731_v30, %v1731_v30  ;;  %1734 = vtanh.f32 %v519_v28 }
 0x153   :  { %1064 = vmatmul.bf16.vlgmr.msra.gmra.mxu0 %v532_v31 }
 0x154   :  { %v431_v33 = vpop.f32.mrf.mxu2  ;;  %v444_v36 = vpop.f32.mrf.mxu3  ;;  %1077 = vmatmul.bf16.vlgmr.msra.gmra.mxu1 %v533_v32 }
 0x155   :  { %v455_v38 = vpop.f32.mrf.mxu0  ;;  %v468_v35 = vpop.f32.mrf.mxu1  ;;  %1260 = vmatpush.bf16.msra.mxu1 %v1703_v13 }
 0x156   :  { %v456_v39 = vadd.f32 %v455_v38, %v2124_v50  ;;  %v469_v40 = vadd.f32 %v468_v35, %v2126_v51  ;;  %v1700_v38 = vld [vmem:[%s2249_s9] sm:$0xff] }
 0x157   :  { %v1733_v41 = vpop.eup %1732  ;;  %v1726_v35 = vld [vmem:[%s2248_s8] ss:$0 sm:$0xff] }
 0x158   :  { %v1735_v42 = vpop.eup %1734  ;;  %v534_v43 = vpack.c.bf16 %v1733_v41, %v1733_v41  ;;  %v520_v44 = vadd.f32 %v504_v37, %v456_v39  ;;  %v521_v45 = vadd.f32 %v505_v34, %v469_v40  ;;  %v1702_v37 = vld [vmem:[%s2249_s9 + $0x10] sm:$0xff]  ;;  %v1701_v34 = vld [vmem:[%s2249_s9 + $0x8] sm:$0xff] }
 0x159   :  { %v535_v46 = vpack.c.bf16 %v1735_v42, %v1735_v42  ;;  %1261 = vmatpush.bf16.msra.mxu1 %v1702_v37 }
 0x15a   :  { %1736 = vtanh.f32 %v520_v44  ;;  %1090 = vmatmul.bf16.vlgmr.msra.gmra.mxu2 %v534_v43  ;;  %v1727_v44 = vld [vmem:[%s2250_s10] ss:$0 sm:$0xff] }
 0x15b   :  { %1738 = vtanh.f32 %v521_v45  ;;  %1103 = vmatmul.bf16.vlgmr.msra.gmra.mxu3 %v535_v46 }
 0x15c   :  { %v481_v49 = vpop.f32.mrf.mxu2  ;;  %v494_v52 = vpop.f32.mrf.mxu3 }
 0x15d   :  { %v482_v50 = vadd.f32 %v481_v49, %v2146_v58  ;;  %v495_v51 = vadd.f32 %v494_v52, %v2148_v59  ;;  %v457_v53 = vpop.f32.mrf.mxu0  ;;  %v470_v54 = vpop.f32.mrf.mxu1  ;;  %v1699_v59 = vld [vmem:[%s2247_s7 + $0x18] sm:$0xff]  ;;  %1262 = vmatpush.bf16.msra.mxu1 %v1701_v34 }
 0x15e   :  { %1206 = vmatpush.bf16.msra.mxu0 %v1699_v59 }
 0x15f   :  { %v522_v55 = vadd.f32 %v506_v47, %v482_v50  ;;  %v523_v56 = vadd.f32 %v507_v48, %v495_v51 }
 0x160   :  { %v1737_v57 = vpop.eup %1736 }
 0x161   :  { %v1739_v60 = vpop.eup %1738  ;;  %v536_v61 = vpack.c.bf16 %v1737_v57, %v1737_v57  ;;  %1740 = vtanh.f32 %v522_v55  ;;  %1263 = vmatpush.bf16.msra.mxu1 %v1700_v38 }
 0x162   :  { %v537_v62 = vpack.c.bf16 %v1739_v60, %v1739_v60  ;;  %1742 = vtanh.f32 %v523_v56  ;;  %1207 = vmatpush.bf16.msra.mxu0 %v1698_v4 }
 0x163   :  { %1116 = vmatmul.bf16.vlgmr.msrb.gmra.mxu0 %v536_v61 }
 0x164   :  { %v483_v63 = vpop.f32.mrf.mxu2  ;;  %v496_v0 = vpop.f32.mrf.mxu3  ;;  %1129 = vmatmul.bf16.vlgmr.msrb.gmra.mxu1 %v537_v62 }
 0x166   :  { %1208 = vmatpush.bf16.msra.mxu0 %v1697_v7 }
 0x167   :  { %v1741_v1 = vpop.eup %1740 }
 0x168   :  { %v1743_v2 = vpop.eup %1742  ;;  %v538_v3 = vpack.c.bf16 %v1741_v1, %v1741_v1 }
 0x169   :  { %v539_v58 = vpack.c.bf16 %v1743_v2, %v1743_v2 }
 0x16a   :  { %1142 = vmatmul.bf16.vlgmr.msrb.gmra.mxu2 %v538_v3  ;;  %1209 = vmatpush.bf16.msra.mxu0 %v1696_v9 }
 0x16b   :  { %1155 = vmatmul.bf16.vlgmr.msrb.gmra.mxu3 %v539_v58 }
 0x1d0   :  { %v1065_v5 = vpop.f32.mrf.mxu0 }
 0x1d1   :  { %v1078_v6 = vpop.f32.mrf.mxu1  ;;  %v1066_v12 = vadd.f32 %v1725_v8, %v1065_v5 }
 0x1d3   :  { %v1079_v17 = vadd.f32 %v1078_v6, %v1066_v12 }
 0x1d8   :  { %v1067_v10 = vpop.f32.mrf.mxu0 }
 0x1d9   :  { %v1080_v11 = vpop.f32.mrf.mxu1 }
 0x1dd   :  { %v1091_v16 = vpop.f32.mrf.mxu2 }
 0x1de   :  { %v1104_v18 = vpop.f32.mrf.mxu3  ;;  %v1092_v19 = vadd.f32 %v1091_v16, %v1079_v17 }
 0x1e0   :  { %v1117_v14 = vpop.f32.mrf.mxu0  ;;  %v1105_v20 = vadd.f32 %v1104_v18, %v1092_v19 }
 0x1e1   :  { %v1130_v15 = vpop.f32.mrf.mxu1 }
 0x1e2   :  { %v1118_v23 = vadd.f32 %v1117_v14, %v1105_v20 }
 0x1e4   :  { %v1131_v26 = vadd.f32 %v1130_v15, %v1118_v23 }
 0x1e5   :  { %v1093_v21 = vpop.f32.mrf.mxu2 }
 0x1e6   :  { %v1106_v22 = vpop.f32.mrf.mxu3 }
 0x1e8   :  { %v1119_v24 = vpop.f32.mrf.mxu0 }
 0x1e9   :  { %v1132_v25 = vpop.f32.mrf.mxu1 }
 0x1ed   :  { %v1143_v27 = vpop.f32.mrf.mxu2 }
 0x1ee   :  { %v1144_v28 = vadd.f32 %v1143_v27, %v1131_v26  ;;  %v1156_v29 = vpop.f32.mrf.mxu3 }
 0x1f0   :  { %v1157_v30 = vadd.f32 %v1156_v29, %v1144_v28 }
 0x1f2   :  { %1744 = vtanh.f32 %v1157_v30 }
 0x1f5   :  { %v1145_v31 = vpop.f32.mrf.mxu2 }
 0x1f6   :  { %v1158_v32 = vpop.f32.mrf.mxu3 }
 0x1f8   :  { %v1745_v33 = vpop.eup %1744 }
 0x1f9   :  { %v1161_v36 = vpack.c.bf16 %v1745_v33, %v1745_v33 }
 0x1fb   :  { %1606 = vmatmul.msk.bf16.vlgmr.msra.gmra.mxu0 %vm1198_vm6, %v1161_v36 }
 0x278   :  { %v1211_v39 = vpop.f32.mrf.mxu0 }
 0x279   :  { %v1212_v40 = vadd.f32 %v1726_v35, %v1211_v39 }
 0x27b   :  { %1746 = vtanh.f32 %v1212_v40 }
 0x280   :  { %v1213_v41 = vpop.f32.mrf.mxu0 }
 0x281   :  { %v1747_v42 = vpop.eup %1746 }
 0x282   :  { %v1216_v43 = vpack.c.bf16 %v1747_v42, %v1747_v42 }
 0x284   :  { %1623 = vmatmul.msk.bf16.vlgmr.msra.gmra.mxu1 %vm1198_vm6, %v1216_v43 }
 0x301   :  { %v1265_v45 = vpop.f32.mrf.mxu1 }
 0x302   :  { %v1266_v46 = vadd.f32 %v1727_v44, %v1265_v45 }
 0x304   :  { %1269 = vst.msk [vmem:[#allocation2] sm:$0xff] %vm1198_vm6, %v1266_v46 }
 0x305   :  { %1280 = dma.vmem_to_hbm [thread:$0]  %s1276_s4, 128, %s1278_s18, [#allocation3]  }
 0x309   :  { %v1267_v47 = vpop.f32.mrf.mxu1 }
 0x30a   :  { %1772 = dma.done.wait [#allocation3], 128  }
 0x30b   :  { %1773 = vsyncadd [#allocation3], 4294967168 }
 0x30c   :  { %1285 = vsyncpa [#allocation3], 1 }

</bundles_post_ra>
